<compile_context>
chip_gen: v6e
topology: v6e:2x2x1
jax: 0.10.0
libtpu: 0.0.40
codegen_flags: <defaults>
</compile_context>

<pallas_src>
import functools

import jax
import jax.numpy as jnp
from jax.experimental import pallas as pl
from jax.experimental.pallas import tpu as pltpu


def _round_up(x, m):
    return ((x + m - 1) // m) * m


def _vmem_capacity_bytes():
    """Physical VMEM per TensorCore (128 MiB v5e/v6e, 64 MiB v7x)."""
    try:
        cap = int(pltpu.get_tpu_info().vmem_capacity_bytes)
        if cap > 0:
            return cap
    except Exception:
        pass
    return 64 * 1024 * 1024  # conservative fallback (v7x per-core)


def _pick_i_tile(*, hw, hw_pad, heads, dim_head, inner, c_pad, attn_bytes,
                 batch, budget_bytes, min_steps=8):
    """Largest i-tile (multiple of 8 dividing hw, or full hw) whose working set
    fits the VMEM budget, preferring tiles that still give >= min_steps grid
    steps (keeps both v7x TensorCores busy when batch is small)."""
    if hw % 8 == 0:
        cands = [d for d in range(8, hw + 1, 8) if hw % d == 0]
    else:
        cands = [hw]                      # full extent is always a legal block dim

    dh_vmem = _round_up(max(dim_head, 1), 128)   # lane-padded V footprint in VMEM

    def vmem_use(ti):
        attn_buf = 2 * heads * ti * hw_pad * attn_bytes   # double-buffered input
        x_buf = 2 * ti * c_pad * 4                        # residual slice
        out_buf = 2 * ti * c_pad * 4
        v_buf = 2 * heads * hw_pad * dh_vmem * 2          # constant over the i axis
        wp_buf = 2 * inner * c_pad * 2
        # in-body temporaries: per-head bf16 attn cast, per-head o, concat, proj
        tmp = ti * hw_pad * 2 + ti * inner * 10 + ti * c_pad * 4
        return attn_buf + x_buf + out_buf + v_buf + wp_buf + tmp

    fitting = [d for d in cands if vmem_use(d) <= budget_bytes]
    if not fitting:
        return min(cands)
    enough = [d for d in fitting if batch * (hw // d) >= min_steps]
    if enough:
        return max(enough)
    return max(fitting)


def _aggregate_kernel(x_ref, attn_ref, v_ref, wp_ref, gamma_ref, out_ref, *, heads):
    # Per-head attention apply.  attn is cast to bf16 tile-by-tile here (cheap
    # VPU work hidden under the attn DMA) so the dominant HBM stream is read
    # exactly once in whatever dtype the caller provides (f32 here; bf16 / fp8
    # if the upstream softmax emits it).
    o_heads = []
    for h in range(heads):                               # static -> unrolled
        a_h = attn_ref[0, h].astype(jnp.bfloat16)        # (ti, hw_pad)
        v_h = v_ref[0, h]                                # (hw_pad, dim_head) bf16
        o_heads.append(jnp.dot(a_h, v_h, preferred_element_type=jnp.float32))

    # Head concat stays in registers/VMEM temporaries (no masked column stores
    # into scratch), then ONE lane-dense projection with K = heads*dim_head.
    o = jnp.concatenate(o_heads, axis=-1).astype(jnp.bfloat16)        # (ti, inner)
    p = jnp.dot(o, wp_ref[...], preferred_element_type=jnp.float32)   # (ti, c_pad)

    # Residual add in f32 on just this i-tile.
    out_ref[0] = x_ref[0] + gamma_ref[0, 0] * p


def aggregate_forward(attn, fmap, wv, wp, gamma, *, heads, dim_head):
    """attn: (b, heads, hw, hw); fmap: (b, dim, H, W) [NCHW];
    wv: (inner, dim, 1, 1); wp: (dim, inner, 1, 1) or None; gamma: (1,)."""
    b, c, H, W = fmap.shape
    hw = H * W
    inner = heads * dim_head
    c_pad = _round_up(c, 128)      # lane-dense channel dim (output stores)
    hw_pad = _round_up(hw, 128)    # lane-dense j/K axis for the a@v matmul

    # NCHW -> channel-last (b, hw, c) f32 (exact residual).
    # TODO(synk): the NCHW<->channel-last transposes and the 1x1-conv V
    # precompute stay in XLA; a fully fused path would need the surrounding
    # model to adopt channel-last layout.
    x = jnp.transpose(fmap.reshape(b, c, hw), (0, 2, 1)).astype(jnp.float32)

    # --- V = to_v(fmap), hoisted out of the i-tile loop: one small bf16 einsum
    # per call, stored head-major so the kernel indexes heads on a leading axis
    # (no sub-128-lane column slices).
    wv_h = jnp.transpose(wv.reshape(heads, dim_head, c).astype(jnp.float32),
                         (0, 2, 1)).astype(jnp.bfloat16)              # (heads, c, d)
    v = jnp.einsum('bxc,hcd->bhxd', x.astype(jnp.bfloat16), wv_h,
                   preferred_element_type=jnp.float32).astype(jnp.bfloat16)
    if hw_pad != hw:
        v = jnp.pad(v, ((0, 0), (0, 0), (0, hw_pad - hw), (0, 0)))

    # Channel padding for lane-dense residual / output.
    if c_pad != c:
        x = jnp.pad(x, ((0, 0), (0, 0), (0, c_pad - c)))

    # project weight (c, inner, 1, 1) -> (inner, c_pad) bf16.  When project is
    # None (dim == inner) an identity reproduces the plain head-concat.
    if wp is None:
        wp_all = jnp.eye(inner, dtype=jnp.float32)
    else:
        wp_all = jnp.transpose(wp.reshape(c, inner).astype(jnp.float32), (1, 0))
    if c_pad != c:
        wp_all = jnp.pad(wp_all, ((0, 0), (0, c_pad - c)))
    wp_all = wp_all.astype(jnp.bfloat16)

    # attn streams in the caller's dtype (no extra cast pass over the dominant
    # tensor); ideally the upstream softmax already emits 128-aligned bf16
    # (or fp8 on v7x) attn so this pad is a no-op as well.
    if hw_pad != hw:
        attn = jnp.pad(attn, ((0, 0), (0, 0), (0, 0), (0, hw_pad - hw)))

    gamma2 = jnp.reshape(gamma.astype(jnp.float32), (1, 1))

    # Generation-aware VMEM budget (v5e/v6e: 128 MiB physical, v7x: 64 MiB).
    cap = _vmem_capacity_bytes()
    tile_budget = int(cap * 0.70)
    vmem_limit = int(cap * 0.85)

    attn_bytes = jnp.dtype(attn.dtype).itemsize
    ti = _pick_i_tile(hw=hw, hw_pad=hw_pad, heads=heads, dim_head=dim_head,
                      inner=inner, c_pad=c_pad, attn_bytes=attn_bytes,
                      batch=b, budget_bytes=tile_budget)
    n_i = hw // ti

    kernel = functools.partial(_aggregate_kernel, heads=heads)

    out = pl.pallas_call(
        kernel,
        out_shape=jax.ShapeDtypeStruct((b, hw, c_pad), jnp.float32),
        grid_spec=pltpu.PrefetchScalarGridSpec(
            num_scalar_prefetch=0,
            grid=(b, n_i),
            in_specs=[
                # x: only the residual slice for this i-tile
                pl.BlockSpec((1, ti, c_pad), lambda bi, ii: (bi, ii, 0)),
                # attn: all heads, one i-tile, full (padded) j extent
                pl.BlockSpec((1, heads, ti, hw_pad), lambda bi, ii: (bi, 0, ii, 0)),
                # V: full per-batch value tensor, head-major (constant over ii)
                pl.BlockSpec((1, heads, hw_pad, dim_head), lambda bi, ii: (bi, 0, 0, 0)),
                # folded projection weight (constant block; small, so default
                # double-buffering is left as-is for portability)
                pl.BlockSpec((inner, c_pad), lambda bi, ii: (0, 0)),
                # gamma scalar
                pl.BlockSpec(memory_space=pltpu.SMEM),
            ],
            out_specs=pl.BlockSpec((1, ti, c_pad), lambda bi, ii: (bi, ii, 0)),
        ),
        compiler_params=pltpu.CompilerParams(
            dimension_semantics=("parallel", "parallel"),
            vmem_limit_bytes=vmem_limit),
    )(x, attn, v, wp_all, gamma2)

    # Strip channel padding, back to NCHW.
    out = out[..., :c]
    return jnp.transpose(out, (0, 2, 1)).reshape(b, c, H, W)


def aggregate_reference(attn, fmap, wv, wp, gamma, *, heads, dim_head):
    """Pure-JAX f32 reference mirroring the PyTorch forward exactly."""
    b, c, H, W = fmap.shape
    hw = H * W
    inner = heads * dim_head
    v = jnp.einsum('oc,bchw->bohw', wv.reshape(inner, c), fmap)
    v = v.reshape(b, heads, dim_head, hw).transpose(0, 1, 3, 2)   # b h (xy) d
    out = jnp.einsum('bhij,bhjd->bhid', attn, v)
    out = out.transpose(0, 1, 3, 2).reshape(b, inner, H, W)       # b (h d) x y
    if wp is not None:
        out = jnp.einsum('oc,bchw->bohw', wp.reshape(c, inner), out)
    return fmap + gamma.reshape(()) * out


if __name__ == "__main__":
    # Small shapes consistent with the module (dim_head keeps the 128 default
    # so every matmul dimension is lane-dense; hw = 16*16 = 256 is 128-aligned).
    B, DIM, H, W = 2, 32, 16, 16
    HEADS, DIM_HEAD = 2, 128
    INNER = HEADS * DIM_HEAD          # 256 != DIM -> project exists
    HW = H * W

    key = jax.random.PRNGKey(0)
    k_attn, k_fmap, k_wv, k_wp = jax.random.split(key, 4)

    attn = jax.nn.softmax(
        jax.random.normal(k_attn, (B, HEADS, HW, HW), jnp.float32), axis=-1)
    fmap = jax.random.normal(k_fmap, (B, DIM, H, W), jnp.float32)

    # Conv2d 1x1 weights; gamma is set non-zero here (module inits it to 0) so
    # the whole attention path is actually exercised by the check.
    wv = jax.random.normal(k_wv, (INNER, DIM, 1, 1), jnp.float32) * (DIM ** -0.5)
    wp = jax.random.normal(k_wp, (DIM, INNER, 1, 1), jnp.float32) * (INNER ** -0.5)
    gamma = jnp.full((1,), 0.5, jnp.float32)
    # TODO(synk): self.scale is defined in __init__ but unused in forward; omitted.

    fwd = jax.jit(functools.partial(aggregate_forward, heads=HEADS, dim_head=DIM_HEAD))
    out = fwd(attn, fmap, wv, wp, gamma)
    out = jax.block_until_ready(out)

    ref = aggregate_reference(attn, fmap, wv, wp, gamma, heads=HEADS, dim_head=DIM_HEAD)
    assert out.shape == fmap.shape and out.dtype == jnp.float32
    # bf16 operands with f32 accumulation -> tolerance well above the ~1e-3
    # quantization error but tight enough to catch any real bug.
    assert jnp.allclose(out, ref, atol=2e-2, rtol=2e-2)
    print("KERNEL_OK")
</pallas_src>

<mosaic_0001>
module attributes {stable_mosaic.version = 11 : i64} {
  func.func @_aggregate_kernel(%arg0: i32, %arg1: i32, %arg2: memref<1x64x128xf32, #tpu.memory_space<vmem>>, %arg3: memref<1x2x64x256xf32, #tpu.memory_space<vmem>>, %arg4: memref<1x2x256x128xbf16, #tpu.memory_space<vmem>>, %arg5: memref<256x128xbf16, #tpu.memory_space<vmem>>, %arg6: memref<1x1xf32, #tpu.memory_space<smem>>, %arg7: memref<1x64x128xf32, #tpu.memory_space<vmem>>) attributes {dimension_semantics = [#tpu.dimension_semantics<parallel>, #tpu.dimension_semantics<parallel>], iteration_bounds = array<i64: 2, 4>, scalar_prefetch = 0 : i64, scratch_operands = 0 : i64, tpu.core_type = #tpu.core_type<tc>, window_params = [{transform_indices = @transform_0, window_bounds = array<i64: 1, 64, 128>}, {transform_indices = @transform_1, window_bounds = array<i64: 1, 2, 64, 256>}, {transform_indices = @transform_2, window_bounds = array<i64: 1, 2, 256, 128>}, {pipeline_mode = #tpu.pipeline_mode<synchronous>, transform_indices = @transform_3, window_bounds = array<i64: 256, 128>}, {transform_indices = @transform_4, window_bounds = array<i64: 1, 1>}, {transform_indices = @transform_5, window_bounds = array<i64: 1, 64, 128>}]} {
    %c0 = arith.constant 0 : index
    %c0_0 = arith.constant 0 : index
    %c0_1 = arith.constant 0 : index
    %c0_2 = arith.constant 0 : index
    %0 = vector.load %arg3[%c0, %c0_0, %c0_1, %c0_2] : memref<1x2x64x256xf32, #tpu.memory_space<vmem>>, vector<1x1x64x256xf32>
    %1 = vector.shape_cast %0 : vector<1x1x64x256xf32> to vector<64x256xf32>
    %2 = arith.truncf %1 : vector<64x256xf32> to vector<64x256xbf16>
    %c0_3 = arith.constant 0 : index
    %c0_4 = arith.constant 0 : index
    %c0_5 = arith.constant 0 : index
    %c0_6 = arith.constant 0 : index
    %3 = vector.load %arg4[%c0_3, %c0_4, %c0_5, %c0_6] : memref<1x2x256x128xbf16, #tpu.memory_space<vmem>>, vector<1x1x256x128xbf16>
    %4 = vector.shape_cast %3 : vector<1x1x256x128xbf16> to vector<256x128xbf16>
    %cst = arith.constant dense<0.000000e+00> : vector<64x128xf32>
    %5 = tpu.matmul %2, %4, %cst {dimension_numbers = #tpu.dot_dimension_numbers<[1], [0], [0], [1], [0, 0, 1, 1], [], []>} : vector<64x256xbf16>, vector<256x128xbf16>, vector<64x128xf32> -> vector<64x128xf32>
    %c0_7 = arith.constant 0 : index
    %c1 = arith.constant 1 : index
    %c0_8 = arith.constant 0 : index
    %c0_9 = arith.constant 0 : index
    %6 = vector.load %arg3[%c0_7, %c1, %c0_8, %c0_9] : memref<1x2x64x256xf32, #tpu.memory_space<vmem>>, vector<1x1x64x256xf32>
    %7 = vector.shape_cast %6 : vector<1x1x64x256xf32> to vector<64x256xf32>
    %8 = arith.truncf %7 : vector<64x256xf32> to vector<64x256xbf16>
    %c0_10 = arith.constant 0 : index
    %c1_11 = arith.constant 1 : index
    %c0_12 = arith.constant 0 : index
    %c0_13 = arith.constant 0 : index
    %9 = vector.load %arg4[%c0_10, %c1_11, %c0_12, %c0_13] : memref<1x2x256x128xbf16, #tpu.memory_space<vmem>>, vector<1x1x256x128xbf16>
    %10 = vector.shape_cast %9 : vector<1x1x256x128xbf16> to vector<256x128xbf16>
    %cst_14 = arith.constant dense<0.000000e+00> : vector<64x128xf32>
    %11 = tpu.matmul %8, %10, %cst_14 {dimension_numbers = #tpu.dot_dimension_numbers<[1], [0], [0], [1], [0, 0, 1, 1], [], []>} : vector<64x256xbf16>, vector<256x128xbf16>, vector<64x128xf32> -> vector<64x128xf32>
    %12 = tpu.concatenate %5, %11 in 1 : vector<64x128xf32>, vector<64x128xf32> -> vector<64x256xf32>
    %13 = arith.truncf %12 : vector<64x256xf32> to vector<64x256xbf16>
    %c0_15 = arith.constant 0 : index
    %c0_16 = arith.constant 0 : index
    %14 = vector.load %arg5[%c0_15, %c0_16] : memref<256x128xbf16, #tpu.memory_space<vmem>>, vector<256x128xbf16>
    %cst_17 = arith.constant dense<0.000000e+00> : vector<64x128xf32>
    %15 = tpu.matmul %13, %14, %cst_17 {dimension_numbers = #tpu.dot_dimension_numbers<[1], [0], [0], [1], [0, 0, 1, 1], [], []>} : vector<64x256xbf16>, vector<256x128xbf16>, vector<64x128xf32> -> vector<64x128xf32>
    %c0_18 = arith.constant 0 : index
    %c0_19 = arith.constant 0 : index
    %c0_20 = arith.constant 0 : index
    %16 = vector.load %arg2[%c0_18, %c0_19, %c0_20] : memref<1x64x128xf32, #tpu.memory_space<vmem>>, vector<1x64x128xf32>
    %17 = vector.shape_cast %16 : vector<1x64x128xf32> to vector<64x128xf32>
    %c0_21 = arith.constant 0 : index
    %c0_22 = arith.constant 0 : index
    %18 = memref.load %arg6[%c0_21, %c0_22] : memref<1x1xf32, #tpu.memory_space<smem>>
    %19 = vector.broadcast %18 : f32 to vector<64x128xf32>
    %20 = arith.mulf %19, %15 : vector<64x128xf32>
    %21 = arith.addf %17, %20 : vector<64x128xf32>
    %c0_23 = arith.constant 0 : index
    %c0_24 = arith.constant 0 : index
    %c0_25 = arith.constant 0 : index
    %22 = vector.load %arg7[%c0_23, %c0_24, %c0_25] : memref<1x64x128xf32, #tpu.memory_space<vmem>>, vector<1x64x128xf32>
    %23 = vector.shape_cast %22 : vector<1x64x128xf32> to vector<64x128xf32>
    %24 = vector.shape_cast %21 : vector<64x128xf32> to vector<1x64x128xf32>
    tpu.vector_store %arg7[%c0_23, %c0_24, %c0_25], %24 {strides = array<i32>} : memref<1x64x128xf32, #tpu.memory_space<vmem>>, vector<1x64x128xf32>,
    return
  }
  func.func @transform_0(%arg0: i32, %arg1: i32) -> (i32, i32, i32) {
    %c0_i32 = arith.constant 0 : i32
    %c0_i32_0 = arith.constant 0 : i32
    return %arg0, %arg1, %c0_i32 : i32, i32, i32
  }
  func.func @transform_1(%arg0: i32, %arg1: i32) -> (i32, i32, i32, i32) {
    %c0_i32 = arith.constant 0 : i32
    %c0_i32_0 = arith.constant 0 : i32
    %c0_i32_1 = arith.constant 0 : i32
    return %arg0, %c0_i32, %arg1, %c0_i32_0 : i32, i32, i32, i32
  }
  func.func @transform_2(%arg0: i32, %arg1: i32) -> (i32, i32, i32, i32) {
    %c0_i32 = arith.constant 0 : i32
    %c0_i32_0 = arith.constant 0 : i32
    %c0_i32_1 = arith.constant 0 : i32
    %c0_i32_2 = arith.constant 0 : i32
    return %arg0, %c0_i32, %c0_i32_0, %c0_i32_1 : i32, i32, i32, i32
  }
  func.func @transform_3(%arg0: i32, %arg1: i32) -> (i32, i32) {
    %c0_i32 = arith.constant 0 : i32
    %c0_i32_0 = arith.constant 0 : i32
    %c0_i32_1 = arith.constant 0 : i32
    return %c0_i32, %c0_i32_0 : i32, i32
  }
  func.func @transform_4(%arg0: i32, %arg1: i32) -> (i32, i32) {
    %c0_i32 = arith.constant 0 : i32
    %c0_i32_0 = arith.constant 0 : i32
    %c0_i32_1 = arith.constant 0 : i32
    return %c0_i32, %c0_i32_0 : i32, i32
  }
  func.func @transform_5(%arg0: i32, %arg1: i32) -> (i32, i32, i32) {
    %c0_i32 = arith.constant 0 : i32
    %c0_i32_0 = arith.constant 0 : i32
    return %arg0, %arg1, %c0_i32 : i32, i32, i32
  }
}

</mosaic_0001>

<bundles_post_ra>
// kernel: aggregate_forward.1
= control target key start
LH: loop header
LB: loop body
LE: loop exit
PB: predicated region body
PF: predicated region fallthrough
CT: control target
= control target key end

     0   :  { %s2066_s0 = inlined_call_operand.vmem [shape: f32[2,256,128], index: 0, kind: input, shape index: {}]   ;;  %s2067_s1 = inlined_call_operand.vmem [shape: f32[2,2,256,256], index: 1, kind: input, shape index: {}]   ;;  %s2068_s2 = inlined_call_operand.vmem [shape: bf16[2,2,256,128], index: 2, kind: input, shape index: {}]   ;;  %s2069_s3 = inlined_call_operand.vmem [shape: bf16[256,128], index: 3, kind: input, shape index: {}]   ;;  %s2070_s4 = inlined_call_operand.<no memory space> [shape: f32[1,1], index: 4, kind: input, shape index: {}]   ;;  %s2071_s5 = inlined_call_operand.hbm [shape: f32[2,256,128], index: 5, kind: output, shape index: {}]  }
   0x1   :  { %10 = sst [smem:[#allocation2]] %s2070_s4 }
   0x2   :  { %11 = vsyncpa [#allocation5], 0 }
   0x3   :  { %13 = vsyncpa [#allocation5 + $0x1], 0  ;;  %s1694_s20 = smov 0   ;;  %s1696_s21 = smov 0  }
   0x4   :  { %s1698_s22 = smov 0   ;;  %s1700_s23 = smov 0  }
   0x5   :  { %s1702_s24 = smov 0   ;;  %s1704_s25 = smov 0  }
   0x6   :  { %s1706_s26 = smov 0   ;;  %s1708_s27 = smov 0  }
   0x7 LB: > { %s1186_s4 = sadd.s32 4294967295, %s1656_s27   ;;  %s1187_s28 = sadd.s32 4294967294, %s1656_s27   ;;  %s1656_s27 = sphi %s1708_s27, %s19_s27   ;;  %s1652_s26 = sphi %s1706_s26, %s2081_s26   ;;  %s1648_s25 = sphi %s1704_s25, %s2080_s25   ;;  %s1644_s24 = sphi %s1702_s24, %s2079_s24   ;;  %s1640_s23 = sphi %s1700_s23, %s2078_s23   ;;  %s1636_s22 = sphi %s1698_s22, %s2077_s22   ;;  %s1632_s21 = sphi %s1696_s21, %s2076_s21   ;;  %s1628_s20 = sphi %s1694_s20, %s2075_s20  }
   0x8   : > { %s28_s29 = sadd.s32 1, %s1648_s25  ;;  %s31_s30 = sadd.s32 1, %s1652_s26 }
   0x9   : > { %p29_p0 = scmp.ge.s32.totalorder %s28_s29, 4  ;;  %p75_p1 = scmp.ne.s32.totalorder %s1636_s22, %s1632_s21 }
   0xa   : > { %p76_p2 = scmp.eq.s32.totalorder %s1656_s27, 0  ;;  %p175_p5 = scmp.eq.s32.totalorder %s1186_s4, 7 }
   0xb   : > { %s2083_s29 = smov (%p29_p0, %s28_s29), 0  ;;  %s2085_s30 = smov (!%p29_p0, %s31_s30), %s1652_s26 }
   0xc   : > { %s64_s6 = ssub.s32 %s1648_s25, %s2083_s29  ;;  %p1746_p3 = por %p76_p2, %p75_p1 }
   0xd   : > { %p33_p4 = scmp.ge.s32.totalorder %s2085_s30, 2  ;;  %p180_p6 = scmp.ne.s32.totalorder %s1632_s21, %s1628_s20 }
   0xe   : > { %p181_p7 = scmp.eq.s32.totalorder %s1187_s28, 7  ;;  %p1754_p8 = por %p175_p5, %p75_p1 }
   0xf   : > { %s2087_s30 = smov (%p33_p4, %s2085_s30), 0  ;;  %s68_s12 = sadd.s32 1, %s1636_s22 }
  0x10   : > { %p1758_p9 = por %p181_p7, %p180_p6  ;;  %s63_s10 = ssub.s32 %s1652_s26, %s2087_s30 }
  0x11   : > { %s65_s11 = sor.u32 %s64_s6, %s63_s10  ;;  %p1189_p11 = scmp.ge.s32.totalorder %s1656_s27, 8 }
  0x12   : > { %p66_p10 = scmp.eq.s32.totalorder %s65_s11, 0 }
  0x13   : > { %203 = sbr.rel (%p1189_p11) target bundleno = 47 (0x2f), region = 24 }
  0x14   : > { %s1766_s13 = scalar_select %p66_p10, %s1636_s22, %s68_s12  }
  0x18   : > { %219 = sbr.rel (!%p1746_p3) target bundleno = 47 (0x2f), region = 32  ;;  %s221_s14 = sand.u32 (%p1746_p3), 1, %s1636_s22  }
  0x19   : > { %s1305_s15 = sshll.u32 (%p1746_p3), %s1648_s25, 4  ;;  %s1190_s16 = sshll.u32 (%p1746_p3), %s221_s14, 8 }
  0x1a   : > { %s1193_s17 = sshll.u32 (%p1746_p3), %s1652_s26, 7  ;;  %s1782_s7 = scalar_lea.vmem (%p1746_p3), [#allocation3], %s1190_s16 }
  0x1b   : > { %s227_s18 = sadd.s32 (%p1746_p3), %s1305_s15, %s1193_s17 }
  0x1c   : > { %s1194_s19 = sshll.u32 (%p1746_p3), %s227_s18, 3 }
  0x1d   : > { %s1777_s6 = scalar_lea.vmem %s2067_s1, %s1194_s19 }
  0x1e   : > { %v242_v0 = vld [vmem:[%s1777_s6] sm:$0xff]  ;;  %v244_v1 = vld [vmem:[%s1777_s6 + $0x8] sm:$0xff]  ;;  %v246_v2 = vld [vmem:[%s1777_s6 + $0x10] sm:$0xff] }
  0x1f   : > { %243 = vst [vmem:[%s1782_s7] sm:$0xff] %v242_v0  ;;  %245 = vst [vmem:[%s1782_s7 + $0x8] sm:$0xff] %v244_v1  ;;  %v248_v3 = vld [vmem:[%s1777_s6 + $0x18] sm:$0xff]  ;;  %v250_v4 = vld [vmem:[%s1777_s6 + $0x20] sm:$0xff] }
  0x20   : > { %247 = vst [vmem:[%s1782_s7 + $0x10] sm:$0xff] %v246_v2  ;;  %v252_v5 = vld [vmem:[%s1777_s6 + $0x28] sm:$0xff]  ;;  %249 = vst [vmem:[%s1782_s7 + $0x18] sm:$0xff] %v248_v3  ;;  %v254_v6 = vld [vmem:[%s1777_s6 + $0x30] sm:$0xff] }
  0x21   : > { %251 = vst [vmem:[%s1782_s7 + $0x20] sm:$0xff] %v250_v4  ;;  %253 = vst [vmem:[%s1782_s7 + $0x28] sm:$0xff] %v252_v5  ;;  %v256_v7 = vld [vmem:[%s1777_s6 + $0x38] sm:$0xff]  ;;  %v258_v8 = vld [vmem:[%s1777_s6 + $0x40] sm:$0xff] }
  0x22   : > { %255 = vst [vmem:[%s1782_s7 + $0x30] sm:$0xff] %v254_v6  ;;  %257 = vst [vmem:[%s1782_s7 + $0x38] sm:$0xff] %v256_v7  ;;  %v260_v9 = vld [vmem:[%s1777_s6 + $0x48] sm:$0xff]  ;;  %v262_v10 = vld [vmem:[%s1777_s6 + $0x50] sm:$0xff] }
  0x23   : > { %259 = vst [vmem:[%s1782_s7 + $0x40] sm:$0xff] %v258_v8  ;;  %v264_v11 = vld [vmem:[%s1777_s6 + $0x58] sm:$0xff]  ;;  %261 = vst [vmem:[%s1782_s7 + $0x48] sm:$0xff] %v260_v9  ;;  %v266_v12 = vld [vmem:[%s1777_s6 + $0x60] sm:$0xff] }
  0x24   : > { %263 = vst [vmem:[%s1782_s7 + $0x50] sm:$0xff] %v262_v10  ;;  %265 = vst [vmem:[%s1782_s7 + $0x58] sm:$0xff] %v264_v11  ;;  %v268_v13 = vld [vmem:[%s1777_s6 + $0x68] sm:$0xff]  ;;  %v270_v14 = vld [vmem:[%s1777_s6 + $0x70] sm:$0xff] }
  0x25   : > { %267 = vst [vmem:[%s1782_s7 + $0x60] sm:$0xff] %v266_v12  ;;  %269 = vst [vmem:[%s1782_s7 + $0x68] sm:$0xff] %v268_v13  ;;  %v272_v15 = vld [vmem:[%s1777_s6 + $0x78] sm:$0xff]  ;;  %v274_v16 = vld [vmem:[%s1777_s6 + $0x200] sm:$0xff] }
  0x26   : > { %271 = vst [vmem:[%s1782_s7 + $0x70] sm:$0xff] %v270_v14  ;;  %v276_v17 = vld [vmem:[%s1777_s6 + $0x208] sm:$0xff]  ;;  %273 = vst [vmem:[%s1782_s7 + $0x78] sm:$0xff] %v272_v15  ;;  %v278_v18 = vld [vmem:[%s1777_s6 + $0x210] sm:$0xff] }
  0x27   : > { %275 = vst [vmem:[%s1782_s7 + $0x80] sm:$0xff] %v274_v16  ;;  %277 = vst [vmem:[%s1782_s7 + $0x88] sm:$0xff] %v276_v17  ;;  %v280_v19 = vld [vmem:[%s1777_s6 + $0x218] sm:$0xff]  ;;  %v282_v20 = vld [vmem:[%s1777_s6 + $0x220] sm:$0xff] }
  0x28   : > { %279 = vst [vmem:[%s1782_s7 + $0x90] sm:$0xff] %v278_v18  ;;  %281 = vst [vmem:[%s1782_s7 + $0x98] sm:$0xff] %v280_v19  ;;  %v284_v21 = vld [vmem:[%s1777_s6 + $0x228] sm:$0xff]  ;;  %v286_v22 = vld [vmem:[%s1777_s6 + $0x230] sm:$0xff] }
  0x29   : > { %283 = vst [vmem:[%s1782_s7 + $0xa0] sm:$0xff] %v282_v20  ;;  %v288_v23 = vld [vmem:[%s1777_s6 + $0x238] sm:$0xff]  ;;  %285 = vst [vmem:[%s1782_s7 + $0xa8] sm:$0xff] %v284_v21  ;;  %v290_v24 = vld [vmem:[%s1777_s6 + $0x240] sm:$0xff] }
  0x2a   : > { %287 = vst [vmem:[%s1782_s7 + $0xb0] sm:$0xff] %v286_v22  ;;  %289 = vst [vmem:[%s1782_s7 + $0xb8] sm:$0xff] %v288_v23  ;;  %v292_v25 = vld [vmem:[%s1777_s6 + $0x248] sm:$0xff]  ;;  %v294_v26 = vld [vmem:[%s1777_s6 + $0x250] sm:$0xff] }
  0x2b   : > { %291 = vst [vmem:[%s1782_s7 + $0xc0] sm:$0xff] %v290_v24  ;;  %293 = vst [vmem:[%s1782_s7 + $0xc8] sm:$0xff] %v292_v25  ;;  %v296_v27 = vld [vmem:[%s1777_s6 + $0x258] sm:$0xff]  ;;  %v298_v28 = vld [vmem:[%s1777_s6 + $0x260] sm:$0xff] }
  0x2c   : > { %295 = vst [vmem:[%s1782_s7 + $0xd0] sm:$0xff] %v294_v26  ;;  %v300_v29 = vld [vmem:[%s1777_s6 + $0x268] sm:$0xff]  ;;  %297 = vst [vmem:[%s1782_s7 + $0xd8] sm:$0xff] %v296_v27  ;;  %v302_v30 = vld [vmem:[%s1777_s6 + $0x270] sm:$0xff] }
  0x2d   : > { %299 = vst [vmem:[%s1782_s7 + $0xe0] sm:$0xff] %v298_v28  ;;  %301 = vst [vmem:[%s1782_s7 + $0xe8] sm:$0xff] %v300_v29  ;;  %v304_v31 = vld [vmem:[%s1777_s6 + $0x278] sm:$0xff] }
  0x2e   : > { %303 = vst [vmem:[%s1782_s7 + $0xf0] sm:$0xff] %v302_v30  ;;  %305 = vst [vmem:[%s1782_s7 + $0xf8] sm:$0xff] %v304_v31 }
  0x2f PF: > { %p1195_p12 = scmp.ge.s32.totalorder %s1656_s27, 1  ;;  %p318_p13 = scmp.lt.s32.totalorder %s1656_s27, 9 }
  0x31   : > { %p319_p0 = pnand %p1195_p12, %p318_p13 }
  0x32   : > { %p367_p1 = scmp.lt.s32.totalorder (!%p319_p0), %s1644_s24, 1  ;;  %s1849_s10 = sand.u32 (!%p319_p0), 1, %s1632_s21  }
  0x33   : > { %322 = sbr.rel (%p319_p0) target bundleno = 542 (0x21e), region = 59  ;;  %s1196_s11 = sshll.u32 (!%p319_p0), %s1849_s10, 8 }
  0x34   : > { %s1856_s15 = scalar_lea.vmem (!%p319_p0), [#allocation3], %s1196_s11  ;;  %s1976_s4 = sshll.u32 (!%p319_p0), %s1640_s23, 3 }
  0x35   : > { %p369_p2 = scmp.lt.s32.totalorder (!%p319_p0), %s1976_s4, 31  ;;  %s1197_s23 = sshll.u32 (!%p319_p0), %s1849_s10, 6 }
  0x38   : > { %s1853_s12 = scalar_select %p367_p1, %s1644_s24, 1  ;;  %v385_v32 = vld [vmem:[%s1856_s15 + $0x8] sm:$0xff]  ;;  %v387_v33 = vld [vmem:[%s1856_s15 + $0x18] sm:$0xff]  ;;  %v384_v1 = vld [vmem:[%s1856_s15] sm:$0xff] }
  0x39   : > { %v1220_v34 = vld [vmem:[%s1856_s15 + $0x88] sm:$0xff]  ;;  %v401_v35 = vpack.c.bf16 %v387_v33, %v385_v32  ;;  %v1222_v36 = vld [vmem:[%s1856_s15 + $0x98] sm:$0xff]  ;;  %v386_v2 = vld [vmem:[%s1856_s15 + $0x10] sm:$0xff]  ;;  %s370_s28 = scalar_select %p369_p2, %s1976_s4, 31 }
  0x3a   : > { %s1306_s14 = sshll.u32 %s1853_s12, 8  ;;  %v619_v38 = vpack.c.bf16 %v1222_v36, %v1220_v34  ;;  %v1548_v4 = vld [vmem:[%s2069_s3 + $0x78] sm:$0xff]   ;;  %v400_v9 = vpack.c.bf16 %v386_v2, %v384_v1  ;;  %v1219_v11 = vld [vmem:[%s1856_s15 + $0x80] sm:$0xff]  ;;  %v1221_v12 = vld [vmem:[%s1856_s15 + $0x90] sm:$0xff]  ;;  %s1199_s6 = sshll.u32 %s1853_s12, 5 }
  0x3b   : > { %s1864_s18 = scalar_lea.vmem %s2068_s2, %s1306_s14  ;;  %568 = vmatprep.mubr.bf16.mxu0 %v401_v35  ;;  %v1549_v10 = vld [vmem:[%s2069_s3 + $0x38] sm:$0xff]   ;;  %v389_v13 = vld [vmem:[%s1856_s15 + $0x28] sm:$0xff]  ;;  %v618_v14 = vpack.c.bf16 %v1221_v12, %v1219_v11  ;;  %v1550_v20 = vld [vmem:[%s2069_s3 + $0x70] sm:$0xff]   ;;  %s372_s7 = sadd.s32 %s1199_s6, %s370_s28 }
  0x3c   : > { %v1516_v37 = vld [vmem:[%s1864_s18 + $0x78] sm:$0xff]   ;;  %787 = vmatprep.mubr.bf16.mxu1 %v619_v38  ;;  %v1520_v42 = vld [vmem:[%s1864_s18 + $0x70] sm:$0xff]   ;;  %v1524_v46 = vld [vmem:[%s1864_s18 + $0x68] sm:$0xff]   ;;  %s1200_s11 = sshll.u32 %s372_s7, 3  ;;  %s1989_s12 = scalar_lea.vmem [#allocation4], %s1197_s23 }
  0x3d   : > { %v1517_v39 = vld [vmem:[%s1864_s18 + $0xf8] sm:$0xff]   ;;  %1307 = vmatprep.subr.bf16.mxu0 %v1516_v37  ;;  %v1521_v43 = vld [vmem:[%s1864_s18 + $0xf0] sm:$0xff]   ;;  %v1525_v47 = vld [vmem:[%s1864_s18 + $0xe8] sm:$0xff]   ;;  %s1984_s17 = scalar_lea.vmem %s2066_s0, %s1200_s11  ;;  %s1658_s14 = smov [#allocation4]  }
  0x3e   : > { %v1518_v40 = vld [vmem:[%s1864_s18 + $0x38] sm:$0xff]   ;;  %1347 = vmatprep.subr.bf16.mxu1 %v1517_v39  ;;  %v1522_v44 = vld [vmem:[%s1864_s18 + $0x30] sm:$0xff]   ;;  %v1526_v48 = vld [vmem:[%s1864_s18 + $0x28] sm:$0xff]   ;;  %s1568_s16 = sshll.u32 %s1658_s14, 4  ;;  %s1569_s16 = int_to_ptr.vmem [resolvable:$false] %s1568_s16 }
  0x3f   : > { %v1519_v41 = vld [vmem:[%s1864_s18 + $0xb8] sm:$0xff]   ;;  %1308 = vmatpush3.bf16.msra.mxu0 %v1518_v40  ;;  %v1523_v45 = vld [vmem:[%s1864_s18 + $0xb0] sm:$0xff]   ;;  %v1527_v49 = vld [vmem:[%s1864_s18 + $0xa8] sm:$0xff]  }
  0x40   : > { %1348 = vmatpush3.bf16.msra.mxu1 %v1519_v41  ;;  %1309 = vmatprep.subr.bf16.mxu0 %v1520_v42  ;;  %v1528_v50 = vld [vmem:[%s1864_s18 + $0x60] sm:$0xff]   ;;  %v1532_v54 = vld [vmem:[%s1864_s18 + $0x58] sm:$0xff]   ;;  %v1536_v58 = vld [vmem:[%s1864_s18 + $0x50] sm:$0xff]  }
  0x41   : > { %1349 = vmatprep.subr.bf16.mxu1 %v1521_v43  ;;  %v1529_v51 = vld [vmem:[%s1864_s18 + $0xe0] sm:$0xff]   ;;  %v1533_v55 = vld [vmem:[%s1864_s18 + $0xd8] sm:$0xff]   ;;  %v1537_v59 = vld [vmem:[%s1864_s18 + $0xd0] sm:$0xff]  }
  0x42   : > { %v1530_v52 = vld [vmem:[%s1864_s18 + $0x20] sm:$0xff]   ;;  %v1534_v56 = vld [vmem:[%s1864_s18 + $0x18] sm:$0xff]   ;;  %v1538_v60 = vld [vmem:[%s1864_s18 + $0x10] sm:$0xff]  }
  0x43   : > { %1310 = vmatpush3.bf16.msra.mxu0 %v1522_v44  ;;  %v1531_v53 = vld [vmem:[%s1864_s18 + $0xa0] sm:$0xff]   ;;  %v1535_v57 = vld [vmem:[%s1864_s18 + $0x98] sm:$0xff]   ;;  %v1539_v61 = vld [vmem:[%s1864_s18 + $0x90] sm:$0xff]  }
  0x44   : > { %1350 = vmatpush3.bf16.msra.mxu1 %v1523_v45  ;;  %1311 = vmatprep.subr.bf16.mxu0 %v1524_v46  ;;  %v1540_v62 = vld [vmem:[%s1864_s18 + $0x48] sm:$0xff]   ;;  %v1544_v5 = vld [vmem:[%s1864_s18 + $0x40] sm:$0xff]   ;;  %v391_v15 = vld [vmem:[%s1856_s15 + $0x38] sm:$0xff] }
  0x45   : > { %1351 = vmatprep.subr.bf16.mxu1 %v1525_v47  ;;  %v1541_v63 = vld [vmem:[%s1864_s18 + $0xc8] sm:$0xff]   ;;  %v1545_v6 = vld [vmem:[%s1864_s18 + $0xc0] sm:$0xff]   ;;  %v1226_v17 = vld [vmem:[%s1856_s15 + $0xb8] sm:$0xff]  ;;  %v403_v18 = vpack.c.bf16 %v391_v15, %v389_v13 }
  0x46   : > { %v1542_v0 = vld [vmem:[%s1864_s18 + $0x8] sm:$0xff]   ;;  %v1546_v7 = vld [vmem:[%s1864_s18] sm:$0xff]   ;;  %v390_v22 = vld [vmem:[%s1856_s15 + $0x30] sm:$0xff] }
  0x47   : > { %1312 = vmatpush3.bf16.msra.mxu0 %v1526_v48  ;;  %v1543_v3 = vld [vmem:[%s1864_s18 + $0x88] sm:$0xff]   ;;  %v1547_v8 = vld [vmem:[%s1864_s18 + $0x80] sm:$0xff]   ;;  %v1225_v24 = vld [vmem:[%s1856_s15 + $0xb0] sm:$0xff]  ;;  %s1301_s18 = sshll.u32 %s1644_s24, 5  ;;  %s1071_s24 = sshll.u32 %s1989_s12, 4  ;;  %s2012_s24 = int_to_ptr.vmem [resolvable:$true] %s1071_s24 }
  0x48   : > { %1352 = vmatpush3.bf16.msra.mxu1 %v1527_v49  ;;  %1313 = vmatprep.subr.bf16.mxu0 %v1528_v50  ;;  %v1224_v16 = vld [vmem:[%s1856_s15 + $0xa8] sm:$0xff]  ;;  %v388_v21 = vld [vmem:[%s1856_s15 + $0x20] sm:$0xff]  ;;  %v395_v26 = vld [vmem:[%s1856_s15 + $0x58] sm:$0xff]  ;;  %s1068_s19 = sadd.s32 %s1301_s18, %s1976_s4  ;;  %s1056_s4 = scalar_lea.sflag [#allocation5], %s1849_s10 }
  0x49   : > { %1353 = vmatprep.subr.bf16.mxu1 %v1529_v51  ;;  %v621_v19 = vpack.c.bf16 %v1226_v17, %v1224_v16  ;;  %v1223_v23 = vld [vmem:[%s1856_s15 + $0xa0] sm:$0xff]  ;;  %v393_v25 = vld [vmem:[%s1856_s15 + $0x48] sm:$0xff]  ;;  %v1230_v28 = vld [vmem:[%s1856_s15 + $0xd8] sm:$0xff]  ;;  %v402_v29 = vpack.c.bf16 %v390_v22, %v388_v21  ;;  %s1302_s28 = sshll.u32 %s1068_s19, 7  ;;  %s1564_s11 = scalar_lea.vmem %s2012_s24, 1024 }
  0x4a   : > { %v1228_v27 = vld [vmem:[%s1856_s15 + $0xc8] sm:$0xff]  ;;  %v620_v30 = vpack.c.bf16 %v1225_v24, %v1223_v23  ;;  %v405_v31 = vpack.c.bf16 %v395_v26, %v393_v25  ;;  %v1551_v32 = vld [vmem:[%s2069_s3 + $0x30] sm:$0xff]   ;;  %v392_v35 = vld [vmem:[%s1856_s15 + $0x40] sm:$0xff]  ;;  %s2009_s7 = scalar_lea.hbm %s2071_s5, %s1302_s28  ;;  %p1565_p3 = scmp.ne.s32.totalorder %s2012_s24, %s1564_s11 }
  0x4b   : > { %1314 = vmatpush3.bf16.msra.mxu0 %v1530_v52  ;;  %v623_v33 = vpack.c.bf16 %v1230_v28, %v1228_v27  ;;  %v1552_v34 = vld [vmem:[%s2069_s3 + $0x68] sm:$0xff]   ;;  %v394_v36 = vld [vmem:[%s1856_s15 + $0x50] sm:$0xff]  ;;  %v1227_v38 = vld [vmem:[%s1856_s15 + $0xc0] sm:$0xff]  ;;  %p1571_p6 = scmp.lt.s32.totalorder %s2012_s24, %s1569_s16 }
  0x4c   : > { %1354 = vmatpush3.bf16.msra.mxu1 %v1531_v53  ;;  %1315 = vmatprep.subr.bf16.mxu0 %v1532_v54  ;;  %v1553_v37 = vld [vmem:[%s2069_s3 + $0x28] sm:$0xff]   ;;  %v1229_v39 = vld [vmem:[%s1856_s15 + $0xd0] sm:$0xff]  ;;  %v399_v41 = vld [vmem:[%s1856_s15 + $0x78] sm:$0xff]  ;;  %v404_v47 = vpack.c.bf16 %v394_v36, %v392_v35  ;;  %p1566_p4 = pnand %p1565_p3, %p1754_p8 }
  0x4d   : > { %1355 = vmatprep.subr.bf16.mxu1 %v1533_v55  ;;  %v397_v40 = vld [vmem:[%s1856_s15 + $0x68] sm:$0xff]  ;;  %v1554_v42 = vld [vmem:[%s2069_s3 + $0x60] sm:$0xff]   ;;  %v1234_v44 = vld [vmem:[%s1856_s15 + $0xf8] sm:$0xff]  ;;  %v622_v48 = vpack.c.bf16 %v1229_v39, %v1227_v38 }
  0x4e   : > { %v1232_v43 = vld [vmem:[%s1856_s15 + $0xe8] sm:$0xff]  ;;  %v1555_v45 = vld [vmem:[%s2069_s3 + $0x20] sm:$0xff]   ;;  %v1556_v46 = vld [vmem:[%s2069_s3 + $0x58] sm:$0xff]   ;;  %v407_v49 = vpack.c.bf16 %v399_v41, %v397_v40  ;;  %p1567_p5 = pneg %p1566_p4 }
  0x4f   : > { %1316 = vmatpush3.bf16.msra.mxu0 %v1534_v56  ;;  %v1557_v50 = vld [vmem:[%s2069_s3 + $0x18] sm:$0xff]   ;;  %v625_v51 = vpack.c.bf16 %v1234_v44, %v1232_v43  ;;  %v396_v52 = vld [vmem:[%s1856_s15 + $0x60] sm:$0xff]  ;;  %v398_v53 = vld [vmem:[%s1856_s15 + $0x70] sm:$0xff] }
  0x50   : > { %1356 = vmatpush3.bf16.msra.mxu1 %v1535_v57  ;;  %1317 = vmatprep.subr.bf16.mxu0 %v1536_v58  ;;  %v1231_v54 = vld [vmem:[%s1856_s15 + $0xe0] sm:$0xff]  ;;  %v1233_v55 = vld [vmem:[%s1856_s15 + $0xf0] sm:$0xff]  ;;  %v406_v56 = vpack.c.bf16 %v398_v53, %v396_v52  ;;  %s1029_s15 = sld [smem:[#allocation2]] }
  0x51   : > { %1357 = vmatprep.subr.bf16.mxu1 %v1537_v59  ;;  %v624_v57 = vpack.c.bf16 %v1233_v55, %v1231_v54  ;;  %v1558_v58 = vld [vmem:[%s2069_s3 + $0x50] sm:$0xff]  }
  0x52   : > { %v1559_v59 = vld [vmem:[%s2069_s3 + $0x10] sm:$0xff]  }
  0x53   : > { %1318 = vmatpush3.bf16.msra.mxu0 %v1538_v60  ;;  %v1560_v60 = vld [vmem:[%s2069_s3 + $0x48] sm:$0xff]  }
  0x54   : > { %1358 = vmatpush3.bf16.msra.mxu1 %v1539_v61  ;;  %1319 = vmatprep.subr.bf16.mxu0 %v1540_v62  ;;  %v1561_v61 = vld [vmem:[%s2069_s3 + $0x8] sm:$0xff]   ;;  %v1562_v62 = vld [vmem:[%s2069_s3 + $0x40] sm:$0xff]  }
  0x55   : > { %1359 = vmatprep.subr.bf16.mxu1 %v1541_v63  ;;  %v1563_v63 = vld [vmem:[%s2069_s3] sm:$0xff]  }
  0x57   : > { %1320 = vmatpush3.bf16.msra.mxu0 %v1542_v0 }
  0x58   : > { %1360 = vmatpush3.bf16.msra.mxu1 %v1543_v3  ;;  %1321 = vmatprep.subr.bf16.mxu0 %v1544_v5 }
  0x59   : > { %1361 = vmatprep.subr.bf16.mxu1 %v1545_v6 }
  0x5b   : > { %1322 = vmatpush3.bf16.msra.mxu0 %v1546_v7 }
  0x5c   : > { %1362 = vmatpush3.bf16.msra.mxu1 %v1547_v8  ;;  %1387 = vmatprep.subr.bf16.mxu0 %v1548_v4 }
  0x5d   : > { %1427 = vmatprep.subr.bf16.mxu1 %v1548_v4 }
  0x5e   : > { %569 = vmatmul.mubr.bf16.vlgmr.msra.gmra.mxu0 %v400_v9 }
  0x5f   : > { %788 = vmatmul.mubr.bf16.vlgmr.msra.gmra.mxu1 %v618_v14  ;;  %576 = vmatprep.mubr.bf16.mxu0 %v403_v18 }
  0x60   : > { %795 = vmatprep.mubr.bf16.mxu1 %v621_v19  ;;  %1388 = vmatpush3.bf16.msra.mxu0 %v1549_v10 }
  0x61   : > { %1389 = vmatprep.subr.bf16.mxu0 %v1550_v20  ;;  %1435 = vmatpush3.bf16.msra.mxu1 %v1549_v10 }
  0x62   : > { %1428 = vmatprep.subr.bf16.mxu1 %v1550_v20 }
  0x64   : > { %1390 = vmatpush3.bf16.msra.mxu0 %v1551_v32 }
  0x65   : > { %1436 = vmatpush3.bf16.msra.mxu1 %v1551_v32  ;;  %1391 = vmatprep.subr.bf16.mxu0 %v1552_v34 }
  0x66   : > { %577 = vmatmul.mubr.bf16.gmra.mxu0 %v402_v29  ;;  %1429 = vmatprep.subr.bf16.mxu1 %v1552_v34 }
  0x67   : > { %796 = vmatmul.mubr.bf16.gmra.mxu1 %v620_v30  ;;  %584 = vmatprep.mubr.bf16.mxu0 %v405_v31 }
  0x68   : > { %803 = vmatprep.mubr.bf16.mxu1 %v623_v33  ;;  %1392 = vmatpush3.bf16.msra.mxu0 %v1553_v37 }
  0x69   : > { %1437 = vmatpush3.bf16.msra.mxu1 %v1553_v37  ;;  %1393 = vmatprep.subr.bf16.mxu0 %v1554_v42 }
  0x6a   : > { %1430 = vmatprep.subr.bf16.mxu1 %v1554_v42 }
  0x6c   : > { %1394 = vmatpush3.bf16.msra.mxu0 %v1555_v45 }
  0x6d   : > { %1438 = vmatpush3.bf16.msra.mxu1 %v1555_v45  ;;  %1395 = vmatprep.subr.bf16.mxu0 %v1556_v46 }
  0x6e   : > { %585 = vmatmul.mubr.bf16.gmra.mxu0 %v404_v47  ;;  %1431 = vmatprep.subr.bf16.mxu1 %v1556_v46 }
  0x6f   : > { %804 = vmatmul.mubr.bf16.gmra.mxu1 %v622_v48  ;;  %592 = vmatprep.mubr.bf16.mxu0 %v407_v49 }
  0x70   : > { %811 = vmatprep.mubr.bf16.mxu1 %v625_v51  ;;  %1396 = vmatpush3.bf16.msra.mxu0 %v1557_v50 }
  0x71   : > { %1439 = vmatpush3.bf16.msra.mxu1 %v1557_v50  ;;  %1397 = vmatprep.subr.bf16.mxu0 %v1558_v58 }
  0x72   : > { %1432 = vmatprep.subr.bf16.mxu1 %v1558_v58  ;;  %v1030_v58 = vstv %s1029_s15 }
  0x74   : > { %1398 = vmatpush3.bf16.msra.mxu0 %v1559_v59 }
  0x75   : > { %1440 = vmatpush3.bf16.msra.mxu1 %v1559_v59  ;;  %1399 = vmatprep.subr.bf16.mxu0 %v1560_v60 }
  0x76   : > { %593 = vmatmul.mubr.bf16.gmra.mxu0 %v406_v56  ;;  %1433 = vmatprep.subr.bf16.mxu1 %v1560_v60  ;;  %v1021_v60 = vld [vmem:[%s1984_s17] sm:$0xff] }
  0x77   : > { %812 = vmatmul.mubr.bf16.gmra.mxu1 %v624_v57 }
  0x78   : > { %1400 = vmatpush3.bf16.msra.mxu0 %v1561_v61 }
  0x79   : > { %1441 = vmatpush3.bf16.msra.mxu1 %v1561_v61  ;;  %1401 = vmatprep.subr.bf16.mxu0 %v1562_v62 }
  0x7a   : > { %1434 = vmatprep.subr.bf16.mxu1 %v1562_v62 }
  0x7c   : > { %1402 = vmatpush3.bf16.msra.mxu0 %v1563_v63 }
  0x7d   : > { %1442 = vmatpush3.bf16.msra.mxu1 %v1563_v63 }
 0x11e   : > { %v1323_v0 = vpop.f32.mrf.mxu0 }
 0x11f   : > { %v1363_v1 = vpop.f32.mrf.mxu1 }
 0x120   : > { %v1324_v2 = vpop.f32.mrf.mxu0 }
 0x121   : > { %v1364_v3 = vpop.f32.mrf.mxu1  ;;  %v1325_v7 = vadd.f32 %v1324_v2, %v1323_v0  ;;  %v1022_v2 = vld [vmem:[%s1984_s17 + $0x8] sm:$0xff] }
 0x122   : > { %v1326_v4 = vpop.f32.mrf.mxu0  ;;  %v1365_v10 = vadd.f32 %v1364_v3, %v1363_v1 }
 0x123   : > { %v1366_v5 = vpop.f32.mrf.mxu1 }
 0x124   : > { %v1327_v6 = vpop.f32.mrf.mxu0 }
 0x125   : > { %v1328_v8 = vadd.f32 %v1327_v6, %v1326_v4  ;;  %v1367_v9 = vpop.f32.mrf.mxu1 }
 0x126   : > { %v1368_v11 = vadd.f32 %v1367_v9, %v1366_v5  ;;  %v1329_v12 = vpop.f32.mrf.mxu0 }
 0x127   : > { %v820_v13 = vpack.c.bf16 %v1328_v8, %v1325_v7  ;;  %v1369_v14 = vpop.f32.mrf.mxu1  ;;  %v1023_v8 = vld [vmem:[%s1984_s17 + $0x10] sm:$0xff] }
 0x128   : > { %v821_v15 = vpack.c.bf16 %v1368_v11, %v1365_v10  ;;  %v1330_v16 = vpop.f32.mrf.mxu0 }
 0x129   : > { %v1370_v17 = vpop.f32.mrf.mxu1  ;;  %v1331_v21 = vadd.f32 %v1330_v16, %v1329_v12 }
 0x12a   : > { %988 = vmatprep.mubr.bf16.mxu0 %v821_v15  ;;  %v1332_v18 = vpop.f32.mrf.mxu0  ;;  %v1371_v24 = vadd.f32 %v1370_v17, %v1369_v14  ;;  %v1024_v14 = vld [vmem:[%s1984_s17 + $0x18] sm:$0xff] }
 0x12b   : > { %v1372_v19 = vpop.f32.mrf.mxu1  ;;  %989 = vmatmul.mubr.bf16.vlgmr.msra.gmra.mxu0 %v820_v13 }
 0x12c   : > { %v1333_v20 = vpop.f32.mrf.mxu0 }
 0x12d   : > { %v1334_v22 = vadd.f32 %v1333_v20, %v1332_v18  ;;  %v1373_v23 = vpop.f32.mrf.mxu1  ;;  %v1025_v20 = vld [vmem:[%s1984_s17 + $0x20] sm:$0xff] }
 0x12e   : > { %v1374_v25 = vadd.f32 %v1373_v23, %v1372_v19  ;;  %v1335_v26 = vpop.f32.mrf.mxu0 }
 0x12f   : > { %v822_v27 = vpack.c.bf16 %v1334_v22, %v1331_v21  ;;  %v1375_v28 = vpop.f32.mrf.mxu1 }
 0x130   : > { %v823_v29 = vpack.c.bf16 %v1374_v25, %v1371_v24  ;;  %v1336_v30 = vpop.f32.mrf.mxu0 }
 0x131   : > { %v1376_v31 = vpop.f32.mrf.mxu1  ;;  %v1337_v35 = vadd.f32 %v1336_v30, %v1335_v26  ;;  %v1026_v26 = vld [vmem:[%s1984_s17 + $0x28] sm:$0xff] }
 0x132   : > { %996 = vmatprep.mubr.bf16.mxu0 %v823_v29  ;;  %v1338_v32 = vpop.f32.mrf.mxu0  ;;  %v1377_v38 = vadd.f32 %v1376_v31, %v1375_v28 }
 0x133   : > { %v1378_v33 = vpop.f32.mrf.mxu1  ;;  %997 = vmatmul.mubr.bf16.gmra.mxu0 %v822_v27 }
 0x134   : > { %v1339_v34 = vpop.f32.mrf.mxu0 }
 0x135   : > { %v1340_v36 = vadd.f32 %v1339_v34, %v1338_v32  ;;  %v1379_v37 = vpop.f32.mrf.mxu1  ;;  %v1027_v32 = vld [vmem:[%s1984_s17 + $0x30] sm:$0xff] }
 0x136   : > { %v1380_v39 = vadd.f32 %v1379_v37, %v1378_v33  ;;  %v1341_v40 = vpop.f32.mrf.mxu0 }
 0x137   : > { %v824_v41 = vpack.c.bf16 %v1340_v36, %v1337_v35  ;;  %v1381_v42 = vpop.f32.mrf.mxu1 }
 0x138   : > { %v825_v43 = vpack.c.bf16 %v1380_v39, %v1377_v38  ;;  %v1342_v44 = vpop.f32.mrf.mxu0  ;;  %v1028_v38 = vld [vmem:[%s1984_s17 + $0x38] sm:$0xff]  ;;  %s1570_s17 = scalar_lea.vmem %s1569_s16, 2048 }
 0x139   : > { %v1382_v45 = vpop.f32.mrf.mxu1  ;;  %v1343_v49 = vadd.f32 %v1342_v44, %v1341_v40  ;;  %p1572_p7 = scmp.lt.s32.totalorder %s1570_s17, %s1564_s11 }
 0x13a   : > { %1004 = vmatprep.mubr.bf16.mxu1 %v825_v43  ;;  %v1344_v46 = vpop.f32.mrf.mxu0  ;;  %v1383_v52 = vadd.f32 %v1382_v45, %v1381_v42 }
 0x13b   : > { %v1384_v47 = vpop.f32.mrf.mxu1  ;;  %1005 = vmatmul.mubr.bf16.vlgmr.msra.gmra.mxu1 %v824_v41  ;;  %p1573_p10 = por %p1572_p7, %p1571_p6 }
 0x13c   : > { %v1345_v48 = vpop.f32.mrf.mxu0 }
 0x13d   : > { %v1346_v50 = vadd.f32 %v1345_v48, %v1344_v46  ;;  %v1385_v51 = vpop.f32.mrf.mxu1  ;;  %p1574_p11 = pnand %p1573_p10, %p1567_p5 }
 0x13e   : > { %v1386_v53 = vadd.f32 %v1385_v51, %v1384_v47 }
 0x13f   : > { %v826_v54 = vpack.c.bf16 %v1346_v50, %v1343_v49 }
 0x140   : > { %v827_v55 = vpack.c.bf16 %v1386_v53, %v1383_v52 }
 0x142   : > { %1012 = vmatprep.mubr.bf16.mxu1 %v827_v55 }
 0x143   : > { %1013 = vmatmul.mubr.bf16.gmra.mxu1 %v826_v54 }
 0x1eb   : > { %v1403_v56 = vpop.f32.mrf.mxu0 }
 0x1ed   : > { %v1404_v57 = vpop.f32.mrf.mxu0 }
 0x1ee   : > { %v1405_v59 = vadd.f32 %v1404_v57, %v1403_v56 }
 0x1ef   : > { %v1406_v61 = vpop.f32.mrf.mxu0 }
 0x1f0   : > { %v1031_v62 = vmul.f32 %v1405_v59, %v1030_v58 }
 0x1f1   : > { %v1407_v63 = vpop.f32.mrf.mxu0 }
 0x1f2   : > { %v1039_v0 = vadd.f32 %v1031_v62, %v1021_v60  ;;  %v1408_v1 = vadd.f32 %v1407_v63, %v1406_v61 }
 0x1f3   : > { %v1409_v3 = vpop.f32.mrf.mxu0 }
 0x1f4   : > { %1047 = vst [vmem:[%s1989_s12] sm:$0xff] %v1039_v0  ;;  %v1032_v4 = vmul.f32 %v1408_v1, %v1030_v58 }
 0x1f5   : > { %v1410_v5 = vpop.f32.mrf.mxu0 }
 0x1f6   : > { %v1040_v6 = vadd.f32 %v1032_v4, %v1022_v2  ;;  %v1411_v7 = vadd.f32 %v1410_v5, %v1409_v3 }
 0x1f7   : > { %v1412_v9 = vpop.f32.mrf.mxu0 }
 0x1f8   : > { %1048 = vst [vmem:[%s1989_s12 + $0x8] sm:$0xff] %v1040_v6  ;;  %v1033_v10 = vmul.f32 %v1411_v7, %v1030_v58 }
 0x1f9   : > { %v1413_v11 = vpop.f32.mrf.mxu0 }
 0x1fa   : > { %v1041_v12 = vadd.f32 %v1033_v10, %v1023_v8  ;;  %v1414_v13 = vadd.f32 %v1413_v11, %v1412_v9 }
 0x1fb   : > { %v1415_v15 = vpop.f32.mrf.mxu1 }
 0x1fc   : > { %1049 = vst [vmem:[%s1989_s12 + $0x10] sm:$0xff] %v1041_v12  ;;  %v1034_v16 = vmul.f32 %v1414_v13, %v1030_v58 }
 0x1fd   : > { %v1416_v17 = vpop.f32.mrf.mxu1 }
 0x1fe   : > { %v1042_v18 = vadd.f32 %v1034_v16, %v1024_v14  ;;  %v1417_v19 = vadd.f32 %v1416_v17, %v1415_v15 }
 0x1ff   : > { %v1418_v21 = vpop.f32.mrf.mxu1 }
 0x200   : > { %1050 = vst [vmem:[%s1989_s12 + $0x18] sm:$0xff] %v1042_v18  ;;  %v1035_v22 = vmul.f32 %v1417_v19, %v1030_v58 }
 0x201   : > { %v1419_v23 = vpop.f32.mrf.mxu1 }
 0x202   : > { %v1043_v24 = vadd.f32 %v1035_v22, %v1025_v20  ;;  %v1420_v25 = vadd.f32 %v1419_v23, %v1418_v21 }
 0x203   : > { %v1421_v27 = vpop.f32.mrf.mxu1 }
 0x204   : > { %1051 = vst [vmem:[%s1989_s12 + $0x20] sm:$0xff] %v1043_v24  ;;  %v1036_v28 = vmul.f32 %v1420_v25, %v1030_v58 }
 0x205   : > { %v1422_v29 = vpop.f32.mrf.mxu1 }
 0x206   : > { %v1044_v30 = vadd.f32 %v1036_v28, %v1026_v26  ;;  %v1423_v31 = vadd.f32 %v1422_v29, %v1421_v27 }
 0x207   : > { %v1424_v33 = vpop.f32.mrf.mxu1 }
 0x208   : > { %1052 = vst [vmem:[%s1989_s12 + $0x28] sm:$0xff] %v1044_v30  ;;  %v1037_v34 = vmul.f32 %v1423_v31, %v1030_v58 }
 0x209   : > { %v1425_v35 = vpop.f32.mrf.mxu1 }
 0x20a   : > { %v1045_v36 = vadd.f32 %v1037_v34, %v1027_v32  ;;  %v1426_v37 = vadd.f32 %v1425_v35, %v1424_v33 }
 0x20c   : > { %1053 = vst [vmem:[%s1989_s12 + $0x30] sm:$0xff] %v1045_v36  ;;  %v1038_v39 = vmul.f32 %v1426_v37, %v1030_v58 }
 0x20e   : > { %v1046_v40 = vadd.f32 %v1038_v39, %v1028_v38 }
 0x210   : > { %1054 = vst [vmem:[%s1989_s12 + $0x38] sm:$0xff] %v1046_v40 }
 0x211   : > { %1577 = shalt.err (!%p1574_p11)
}
 0x212   : > { %s1578_s23 = scalar_lea.hbm %s2009_s7, 1024  ;;  %s1582_s19 = scalar_lea.hbm %s2071_s5, 8192 }
 0x213   : > { %p1579_p12 = scmp.ne.s32.totalorder %s2009_s7, %s1578_s23  ;;  %p1583_p1 = scmp.lt.s32.totalorder %s2009_s7, %s2071_s5 }
 0x214   : > { %p1584_p2 = scmp.lt.s32.totalorder %s1582_s19, %s1578_s23 }
 0x215   : > { %p1580_p13 = pnand %p1579_p12, %p1754_p8 }
 0x216   : > { %p1585_p3 = por %p1584_p2, %p1583_p1 }
 0x217   : > { %p1581_p0 = pneg %p1580_p13 }
 0x219   : > { %p1586_p4 = pnand %p1585_p3, %p1581_p0 }
 0x21b   : > { %1589 = shalt.err (!%p1586_p4)
}
 0x21c   : > { %s1659_s15 = smov 128   ;;  %s1660_s11 = smov 8  }
 0x21d   : > { %1443 = dma.vmem_to_hbm [thread:$0]  (%p1754_p8), %s2012_s24, 1024, %s2009_s7, %s1056_s4, %s1659_s15, %s1659_s15, %s1660_s11  }
 0x21e PF: > { %p1449_p5 = scmp.ge.s32.totalorder %s1656_s27, 2  ;;  %s1086_s14 = sand.u32 1, %s1628_s20  }
 0x21f   : > { %s1087_s16 = scalar_lea.sflag [#allocation5], %s1086_s14 }
 0x220   : > { %p1446_p6 = pnand %p1449_p5, %p1758_p9 }
 0x222   : > { %p1447_p7 = pneg %p1446_p6 }
 0x224   : > { %1623 = dma.done.wait (%p1447_p7), %s1087_s16, 1024  }
 0x225   : > { %1625 = vsyncadd (%p1447_p7), %s1087_s16, 4294966272  ;;  %s19_s27 = sadd.s32 1, %s1656_s27   ;;  %s2075_s20 = smov %s1632_s21 }
 0x226   : > { %p16_p10 = scmp.ge.s32.totalorder %s19_s27, 10   ;;  %s2076_s21 = smov %s1636_s22 }
 0x227   : > { %s2077_s22 = smov %s1766_s13  ;;  %s2078_s23 = smov %s1648_s25 }
 0x228   : > { %s2079_s24 = smov %s1652_s26  ;;  %s2080_s25 = smov %s2083_s29 }
 0x229   : > { %s2081_s26 = smov %s2087_s30  ;;  %18 = sbr.rel (!%p16_p10) target bundleno = 7 (0x7), region = 111 }
 0x22e   :  { %1092 = vsyncpa [#allocation5], 1 }
 0x22f   :  { %1094 = vsyncpa [#allocation5 + $0x1], 1 }

</bundles_post_ra>
